<compile_context>
chip_gen: v7x
topology: tpu7x:2x2x1
jax: 0.10.0
libtpu: 0.0.40
codegen_flags: <defaults>
</compile_context>

<pallas_src>
import functools

import jax
import jax.numpy as jnp
from jax import lax
from jax.experimental import pallas as pl
from jax.experimental.pallas import tpu as pltpu

BN_EPS = 1e-5
GROWTH = 32
BN_SIZE = 4
BOTTLENECK = BN_SIZE * GROWTH        # 128
BLOCK_CONFIG = (6, 12, 32, 32)       # DenseNet169
NUM_INIT_FEATURES = 64


def _round_up(x, m):
    return ((x + m - 1) // m) * m


def _vmem():
    return pl.BlockSpec(memory_space=pltpu.MemorySpace.VMEM)


# ----------------------------- Pallas kernels ------------------------------
def _conv0_kernel(a_ref, w_ref, b_ref, o_ref):
    # im2col matmul (bf16 operands, f32 acc) + folded-norm0 bias + relu0
    y = jnp.dot(a_ref[...], w_ref[...], preferred_element_type=jnp.float32)
    o_ref[...] = jnp.maximum(y + b_ref[...], 0.0)


def _bn_relu_matmul_kernel(a_ref, s_ref, b_ref, w_ref, o_ref):
    # transition: folded BN -> ReLU -> 1x1 conv, fused into one MXU pass
    a = jnp.maximum(a_ref[...] * s_ref[...] + b_ref[...], 0.0)
    o_ref[...] = jnp.dot(a.astype(jnp.bfloat16), w_ref[...],
                         preferred_element_type=jnp.float32)


def _make_dense_layer_kernel(B, H, W):
    """Fused dense layer: norm1->relu->conv1(1x1)->norm2->relu->conv2(3x3)."""
    M = B * H * W
    P = W + 1          # zero rows added above/below the bottleneck image rows

    def kernel(x_ref, s1_ref, b1_ref, w1_ref, s2_ref, b2_ref, w2_ref, o_ref):
        # x: (M, Kb) f32   (valid channels first, zero-padded to Kb)
        # w1: (Kb, 128) bf16 ; s1/b1: (1, Kb) f32
        # w2: (9*128, 32) bf16 ; s2/b2: (1, 128) f32 ; o: (M, 32) f32
        a = jnp.maximum(x_ref[...] * s1_ref[...] + b1_ref[...], 0.0)
        bott = jnp.dot(a.astype(jnp.bfloat16), w1_ref[...],
                       preferred_element_type=jnp.float32)          # (M, 128)
        # norm2 -> relu; conv2's zero padding applies AFTER this (exact).
        y = jnp.maximum(bott * s2_ref[...] + b2_ref[...], 0.0)      # (M, 128)

        # 3x3 conv via 9 masked row-shifted reads of the in-VMEM bottleneck,
        # lane-concatenated into one (M, 1152) x (1152, 32) MXU accumulation.
        zpad = jnp.zeros((P, BOTTLENECK), jnp.float32)
        ypad = jnp.concatenate([zpad, y, zpad], axis=0)             # (M+2P,128)
        row = lax.broadcasted_iota(jnp.int32, (M, 1), 0)
        wi = row % W
        hi = (row // W) % H
        taps = []
        for di in (-1, 0, 1):
            vh = jnp.logical_and(hi + di >= 0, hi + di < H)
            for dj in (-1, 0, 1):
                vw = jnp.logical_and(wi + dj >= 0, wi + dj < W)
                m = jnp.logical_and(vh, vw).astype(jnp.float32)     # (M, 1)
                s = di * W + dj
                tap = ypad[P + s:P + s + M, :] * m                  # (M, 128)
                taps.append(tap.astype(jnp.bfloat16))
        cols = jnp.concatenate(taps, axis=1)                        # (M, 1152)
        o_ref[...] = jnp.dot(cols, w2_ref[...],
                             preferred_element_type=jnp.float32)    # (M, 32)

    return kernel


def _max_reduce_kernel(p_ref, o_ref):
    # p: (taps, M, C) -> max over taps  (MaxPool2d)
    o_ref[...] = jnp.max(p_ref[...], axis=0)


def _mean_reduce_kernel(p_ref, o_ref):
    # p: (taps, M, C) -> mean over taps (AvgPool2d)
    o_ref[...] = jnp.mean(p_ref[...], axis=0)


def _head_kernel(x_ref, s_ref, b_ref, w_ref, bias_ref, act_ref, out_ref):
    # x: (B, HW, C); norm5 -> relu -> adaptive_avg_pool2d(1,1) -> Linear
    x = x_ref[...] * s_ref[...][None] + b_ref[...][None]
    x = jnp.maximum(x, 0.0)
    pooled = jnp.mean(x, axis=1)                       # (B, C) == activations
    act_ref[...] = pooled
    out_ref[...] = (jnp.dot(pooled, w_ref[...], preferred_element_type=jnp.float32)
                    + bias_ref[...])


# ------------------------- cached pallas_call builders ---------------------
@functools.lru_cache(maxsize=None)
def _build_conv0(M, K, N):
    tm = 512 if M % 512 == 0 else (256 if M % 256 == 0 else M)
    f = pl.pallas_call(
        _conv0_kernel,
        out_shape=jax.ShapeDtypeStruct((M, N), jnp.float32),
        grid=(M // tm,),
        in_specs=[pl.BlockSpec((tm, K), lambda i: (i, 0)),
                  pl.BlockSpec((K, N), lambda i: (0, 0)),
                  pl.BlockSpec((1, N), lambda i: (0, 0))],
        out_specs=pl.BlockSpec((tm, N), lambda i: (i, 0)),
        compiler_params=pltpu.CompilerParams(dimension_semantics=("parallel",)),
    )
    return jax.jit(f)


@functools.lru_cache(maxsize=None)
def _build_bn_relu_matmul(M, K, N):
    tm = 256 if (M % 256 == 0 and M > 256) else M
    f = pl.pallas_call(
        _bn_relu_matmul_kernel,
        out_shape=jax.ShapeDtypeStruct((M, N), jnp.float32),
        grid=(M // tm,),
        in_specs=[pl.BlockSpec((tm, K), lambda i: (i, 0)),
                  pl.BlockSpec((1, K), lambda i: (0, 0)),
                  pl.BlockSpec((1, K), lambda i: (0, 0)),
                  pl.BlockSpec((K, N), lambda i: (0, 0))],
        out_specs=pl.BlockSpec((tm, N), lambda i: (i, 0)),
        compiler_params=pltpu.CompilerParams(dimension_semantics=("parallel",)),
    )
    return jax.jit(f)


@functools.lru_cache(maxsize=None)
def _build_dense_layer(B, H, W):
    M = B * H * W
    f = pl.pallas_call(
        _make_dense_layer_kernel(B, H, W),
        out_shape=jax.ShapeDtypeStruct((M, GROWTH), jnp.float32),
        in_specs=[_vmem()] * 7,
        out_specs=_vmem(),
    )
    return jax.jit(f)


@functools.lru_cache(maxsize=None)
def _build_reduce(taps, M, C, op):
    kernel = _max_reduce_kernel if op == "max" else _mean_reduce_kernel
    f = pl.pallas_call(
        kernel,
        out_shape=jax.ShapeDtypeStruct((M, C), jnp.float32),
        in_specs=[_vmem()],
        out_specs=_vmem(),
    )
    return jax.jit(f)


@functools.lru_cache(maxsize=None)
def _build_head(B, HW, C, O):
    f = pl.pallas_call(
        _head_kernel,
        out_shape=(jax.ShapeDtypeStruct((B, C), jnp.float32),
                   jax.ShapeDtypeStruct((B, O), jnp.float32)),
        in_specs=[_vmem()] * 5,
        out_specs=(_vmem(), _vmem()),
    )
    return jax.jit(f)


# ------------------------------ JAX glue ops --------------------------------
def _im2col(x, kh, kw, stride, pad):
    # x: (B, H, W, C) NHWC -> (B*oh*ow, kh*kw*C), column order ((i*kw+j)*C + c)
    if pad:
        x = jnp.pad(x, ((0, 0), (pad, pad), (pad, pad), (0, 0)))
    B, H, W, C = x.shape
    oh = (H - kh) // stride + 1
    ow = (W - kw) // stride + 1
    patches = []
    for i in range(kh):
        for j in range(kw):
            patches.append(x[:, i:i + oh * stride:stride, j:j + ow * stride:stride, :])
    cols = jnp.concatenate(patches, axis=-1)
    return cols.reshape(B * oh * ow, kh * kw * C), (B, oh, ow)


def maxpool_3x3_s2_p1(x):
    B, H, W, C = x.shape
    xp = jnp.pad(x, ((0, 0), (1, 1), (1, 1), (0, 0)), constant_values=float("-inf"))
    oh = (H + 2 - 3) // 2 + 1
    ow = (W + 2 - 3) // 2 + 1
    pats = []
    for i in range(3):
        for j in range(3):
            pats.append(xp[:, i:i + oh * 2:2, j:j + ow * 2:2, :].reshape(B * oh * ow, C))
    p = jnp.stack(pats, axis=0)                       # (9, M, C)
    out = _build_reduce(9, B * oh * ow, C, "max")(p)
    return out.reshape(B, oh, ow, C)


def avgpool_2x2_s2(x):
    B, H, W, C = x.shape
    oh, ow = H // 2, W // 2
    pats = []
    for i in range(2):
        for j in range(2):
            pats.append(x[:, i:i + oh * 2:2, j:j + ow * 2:2, :].reshape(B * oh * ow, C))
    p = jnp.stack(pats, axis=0)                       # (4, M, C)
    out = _build_reduce(4, B * oh * ow, C, "mean")(p)
    return out.reshape(B, oh, ow, C)


# ------------------------- parameter initialization -------------------------
def _bn_fold(c):
    # eval-mode BN folded to scale/shift; synthetic stats: gamma=1, beta=0,
    # running_mean=0, running_var=1 (deterministic).
    gamma = jnp.ones((c,), jnp.float32)
    beta = jnp.zeros((c,), jnp.float32)
    mean = jnp.zeros((c,), jnp.float32)
    var = jnp.ones((c,), jnp.float32)
    scale = gamma * lax.rsqrt(var + BN_EPS)
    shift = beta - mean * scale
    return scale, shift


def _conv_weight(key, out_c, in_c, kh, kw):
    fan_in = in_c * kh * kw
    w = jax.random.normal(key, (out_c, in_c, kh, kw), jnp.float32) * jnp.sqrt(2.0 / fan_in)
    # PyTorch (O, I, kh, kw) -> im2col matmul form (kh*kw*I, O); column ordering
    # matches _im2col / the in-kernel tap ordering ((ki*kw + kj)*I + c).
    return jnp.transpose(w, (2, 3, 1, 0)).reshape(kh * kw * in_c, out_c)


def init_densenet169_params(key, out_size):
    kit = iter(jax.random.split(key, 512))
    params = {}

    # conv0 with norm0 folded in:  relu(bn(conv(x))) == relu(x @ (W*s) + b)
    w0 = _conv_weight(next(kit), NUM_INIT_FEATURES, 3, 7, 7)        # (147, 64)
    s0, b0 = _bn_fold(NUM_INIT_FEATURES)
    params["conv0_w"] = (w0 * s0[None, :]).astype(jnp.bfloat16)
    params["conv0_b"] = b0.reshape(1, -1)

    num_feat = NUM_INIT_FEATURES
    blocks, transitions = [], []
    for bi, n_layers in enumerate(BLOCK_CONFIG):
        layers = []
        for li in range(n_layers):
            in_c = num_feat + li * GROWTH
            kb = _round_up(in_c, 128)                 # bucketed K (<=96 slack)
            s1, b1 = _bn_fold(in_c)
            s1 = jnp.pad(s1, (0, kb - in_c)).reshape(1, -1)
            b1 = jnp.pad(b1, (0, kb - in_c)).reshape(1, -1)
            w1 = _conv_weight(next(kit), BOTTLENECK, in_c, 1, 1)    # (in_c, 128)
            w1 = jnp.pad(w1, ((0, kb - in_c), (0, 0))).astype(jnp.bfloat16)
            s2, b2 = _bn_fold(BOTTLENECK)
            s2 = s2.reshape(1, -1)
            b2 = b2.reshape(1, -1)
            w2 = _conv_weight(next(kit), GROWTH, BOTTLENECK, 3, 3)  # (1152, 32)
            w2 = w2.astype(jnp.bfloat16)
            layers.append(dict(w1=w1, s1=s1, b1=b1, w2=w2, s2=s2, b2=b2))
        blocks.append(layers)
        num_feat = num_feat + n_layers * GROWTH
        if bi != len(BLOCK_CONFIG) - 1:
            st, bt = _bn_fold(num_feat)
            wt = _conv_weight(next(kit), num_feat // 2, num_feat, 1, 1)
            transitions.append(dict(w=wt.astype(jnp.bfloat16),
                                    s=st.reshape(1, -1), b=bt.reshape(1, -1)))
            num_feat //= 2
    params["blocks"] = blocks
    params["transitions"] = transitions

    # norm5 + classifier (Linear with zero bias, per the module's init)
    s5, b5 = _bn_fold(num_feat)                       # num_feat == 1664
    bound = 1.0 / float(num_feat) ** 0.5
    wc = jax.random.uniform(next(kit), (out_size, num_feat), jnp.float32, -bound, bound)
    params["head"] = dict(s=s5.reshape(1, -1), b=b5.reshape(1, -1),
                          wc=wc.T, bc=jnp.zeros((1, out_size), jnp.float32))
    params["num_features"] = num_feat
    return params


# ------------------------------ forward pass --------------------------------
def _dense_block(x4d, layers):
    B, H, W, C0 = x4d.shape
    M = B * H * W
    kb = _round_up(C0, 128)
    buf = x4d.reshape(M, C0)
    if kb > C0:
        buf = jnp.pad(buf, ((0, 0), (0, kb - C0)))
    c_cur = C0
    layer_fn = _build_dense_layer(B, H, W)            # shape-poly in K bucket
    for lp in layers:
        new = layer_fn(buf, lp["s1"], lp["b1"], lp["w1"],
                       lp["s2"], lp["b2"], lp["w2"])
        # append 32 growth channels into the bucketed buffer (no concat chain)
        if c_cur + GROWTH <= kb:
            buf = lax.dynamic_update_slice(buf, new, (0, c_cur))
        else:
            buf = jnp.concatenate(
                [buf, new, jnp.zeros((M, 128 - GROWTH), jnp.float32)], axis=1)
            kb += 128
        c_cur += GROWTH
    if c_cur < kb:
        buf = buf[:, :c_cur]
    return buf.reshape(B, H, W, c_cur)


def _transition(x, tp):
    B, H, W, C = x.shape
    M = B * H * W
    y = _build_bn_relu_matmul(M, C, C // 2)(
        x.reshape(M, C), tp["s"], tp["b"], tp["w"])
    return avgpool_2x2_s2(y.reshape(B, H, W, C // 2))


def densenet169_forward(params, x_nchw):
    # layout: input is NCHW (PyTorch convention); transpose to NHWC internally.
    x = jnp.transpose(x_nchw, (0, 2, 3, 1)).astype(jnp.float32)

    # features.conv0 + norm0 + relu0 (BN folded into weights, ReLU in-kernel)
    cols, (B, oh, ow) = _im2col(x, 7, 7, 2, 3)
    cols = cols.astype(jnp.bfloat16)
    y = _build_conv0(cols.shape[0], cols.shape[1], NUM_INIT_FEATURES)(
        cols, params["conv0_w"], params["conv0_b"])
    x = y.reshape(B, oh, ow, NUM_INIT_FEATURES)
    x = maxpool_3x3_s2_p1(x)

    # dense blocks + transitions
    for bi in range(len(BLOCK_CONFIG)):
        x = _dense_block(x, params["blocks"][bi])
        if bi != len(BLOCK_CONFIG) - 1:
            x = _transition(x, params["transitions"][bi])

    # norm5 -> relu -> adaptive_avg_pool2d(1,1) -> classifier (fused head kernel)
    B, H, W, C = x.shape
    hp = params["head"]
    head_fn = _build_head(B, H * W, C, hp["wc"].shape[1])
    activations, out = head_fn(x.reshape(B, H * W, C), hp["s"], hp["b"],
                               hp["wc"], hp["bc"])
    return activations, out


if __name__ == "__main__":
    OUT_SIZE = 5                                      # classifier out_size
    key = jax.random.PRNGKey(0)
    pkey, xkey = jax.random.split(key)
    params = init_densenet169_params(pkey, OUT_SIZE)
    x = jax.random.normal(xkey, (2, 3, 64, 64), jnp.float32)   # NCHW like PyTorch

    activations, out = densenet169_forward(params, x)
    jax.block_until_ready((activations, out))

    assert activations.shape == (2, params["num_features"])    # (2, 1664)
    assert out.shape == (2, OUT_SIZE)
    assert bool(jnp.all(jnp.isfinite(activations))) and bool(jnp.all(jnp.isfinite(out)))
    print("KERNEL_OK")
</pallas_src>

<mosaic_0001>
module attributes {stable_mosaic.version = 11 : i64} {
  func.func @_conv0_kernel(%arg0: i32, %arg1: memref<512x147xbf16, #tpu.memory_space<vmem>>, %arg2: memref<147x64xbf16, #tpu.memory_space<vmem>>, %arg3: memref<1x64xf32, #tpu.memory_space<vmem>>, %arg4: memref<512x64xf32, #tpu.memory_space<vmem>>) attributes {dimension_semantics = [#tpu.dimension_semantics<parallel>], iteration_bounds = array<i64: 4>, scalar_prefetch = 0 : i64, scratch_operands = 0 : i64, tpu.core_type = #tpu.core_type<tc>, window_params = [{transform_indices = @transform_0, window_bounds = array<i64: 512, 147>}, {pipeline_mode = #tpu.pipeline_mode<synchronous>, transform_indices = @transform_1, window_bounds = array<i64: 147, 64>}, {pipeline_mode = #tpu.pipeline_mode<synchronous>, transform_indices = @transform_2, window_bounds = array<i64: 1, 64>}, {transform_indices = @transform_3, window_bounds = array<i64: 512, 64>}]} {
    %c0 = arith.constant 0 : index
    %c0_0 = arith.constant 0 : index
    %0 = vector.load %arg1[%c0, %c0_0] : memref<512x147xbf16, #tpu.memory_space<vmem>>, vector<512x147xbf16>
    %c0_1 = arith.constant 0 : index
    %c0_2 = arith.constant 0 : index
    %1 = vector.load %arg2[%c0_1, %c0_2] : memref<147x64xbf16, #tpu.memory_space<vmem>>, vector<147x64xbf16>
    %cst = arith.constant dense<0.000000e+00> : vector<512x64xf32>
    %2 = tpu.matmul %0, %1, %cst {dimension_numbers = #tpu.dot_dimension_numbers<[1], [0], [0], [1], [0, 0, 1, 1], [], []>} : vector<512x147xbf16>, vector<147x64xbf16>, vector<512x64xf32> -> vector<512x64xf32>
    %c0_3 = arith.constant 0 : index
    %c0_4 = arith.constant 0 : index
    %3 = vector.load %arg3[%c0_3, %c0_4] : memref<1x64xf32, #tpu.memory_space<vmem>>, vector<1x64xf32>
    %4 = vector.broadcast %3 : vector<1x64xf32> to vector<512x64xf32>
    %5 = arith.addf %2, %4 : vector<512x64xf32>
    %cst_5 = arith.constant 0.000000e+00 : f32
    %6 = vector.broadcast %cst_5 : f32 to vector<512x64xf32>
    %7 = arith.maximumf %5, %6 : vector<512x64xf32>
    %c0_6 = arith.constant 0 : index
    %c0_7 = arith.constant 0 : index
    %8 = vector.load %arg4[%c0_6, %c0_7] : memref<512x64xf32, #tpu.memory_space<vmem>>, vector<512x64xf32>
    tpu.vector_store %arg4[%c0_6, %c0_7], %7 {strides = array<i32>} : memref<512x64xf32, #tpu.memory_space<vmem>>, vector<512x64xf32>,
    return
  }
  func.func @transform_0(%arg0: i32) -> (i32, i32) {
    %c0_i32 = arith.constant 0 : i32
    %c0_i32_0 = arith.constant 0 : i32
    return %arg0, %c0_i32 : i32, i32
  }
  func.func @transform_1(%arg0: i32) -> (i32, i32) {
    %c0_i32 = arith.constant 0 : i32
    %c0_i32_0 = arith.constant 0 : i32
    %c0_i32_1 = arith.constant 0 : i32
    return %c0_i32, %c0_i32_0 : i32, i32
  }
  func.func @transform_2(%arg0: i32) -> (i32, i32) {
    %c0_i32 = arith.constant 0 : i32
    %c0_i32_0 = arith.constant 0 : i32
    %c0_i32_1 = arith.constant 0 : i32
    return %c0_i32, %c0_i32_0 : i32, i32
  }
  func.func @transform_3(%arg0: i32) -> (i32, i32) {
    %c0_i32 = arith.constant 0 : i32
    %c0_i32_0 = arith.constant 0 : i32
    return %arg0, %c0_i32 : i32, i32
  }
}

</mosaic_0001>

<bundles_post_ra>
// kernel: tpu_custom_call.1
= control target key start
LH: loop header
LB: loop body
LE: loop exit
PB: predicated region body
PF: predicated region fallthrough
CT: control target
= control target key end

     0   :  { %s1477_s12 = smov 0   ;;  %s1828_s0 = inlined_call_operand.vmem [shape: bf16[2048,147], index: 0, kind: input, shape index: {}]   ;;  %s1829_s1 = inlined_call_operand.vmem [shape: bf16[147,64], index: 1, kind: input, shape index: {}]   ;;  %s1830_s2 = inlined_call_operand.vmem [shape: f32[1,64], index: 2, kind: input, shape index: {}]   ;;  %s1831_s3 = inlined_call_operand.vmem [shape: f32[2048,64], index: 3, kind: output, shape index: {}]  }
   0x1 LB: > { %s1191_s13 = sadd.s32 4294967295, %s1453_s12   ;;  %p1195_p0 = scmp.ge.s32.totalorder %s1453_s12, 1  ;;  %s1453_s12 = sphi %s1477_s12, %s13_s12  }
   0x2   : > { %p139_p1 = scmp.lt.s32.totalorder %s1453_s12, 5 }
   0x4   : > { %p140_p2 = pnand %p1195_p0, %p139_p1 }
   0x5   : > { %v1341_v0 = vld [vmem:[%s1829_s1] sm:$0xff] (!%p140_p2)   ;;  %v1455_v1 = vmov (!%p140_p2), 0   ;;  %v1342_v2 = vld [vmem:[%s1829_s1 + $0x8] sm:$0xff] (!%p140_p2)   ;;  %v1343_v3 = vld [vmem:[%s1829_s1 + $0x10] sm:$0xff] (!%p140_p2)   ;;  %s1196_s20 = sshll.u32 (!%p140_p2), %s1191_s13, 6  ;;  %vm613_vm0 = vcmask (!%p140_p2), 154624  }
   0x6   : > { %143 = sbr.rel (%p140_p2) target bundleno = 385 (0x181), region = 32  ;;  %717 = vmatprep.subr.bf16.mxu0 (!%p140_p2), %v1455_v1  ;;  %1311 = vmatprep.subr.bf16.mxu1 (!%p140_p2), %v1455_v1  ;;  %p165_p3 = scmp.lt.s32.totalorder (!%p140_p2), %s1196_s20, 255  ;;  %v1344_v4 = vld [vmem:[%s1829_s1 + $0x18] sm:$0xff] (!%p140_p2)   ;;  %v1345_v5 = vld [vmem:[%s1829_s1 + $0x20] sm:$0xff] (!%p140_p2)   ;;  %v1346_v8 = vld [vmem:[%s1829_s1 + $0x28] sm:$0xff] (!%p140_p2)   ;;  %vm710_vm1 = vcmask (!%p140_p2), 1040384  }
   0x7   : > { %718 = vmatpush1.bf16.msra.mxu0 (!%p140_p2), %v1341_v0  ;;  %1321 = vmatpush1.bf16.msra.mxu1 (!%p140_p2), %v1341_v0  ;;  %v1347_v9 = vld [vmem:[%s1829_s1 + $0x30] sm:$0xff] (!%p140_p2)   ;;  %v1348_v10 = vld [vmem:[%s1829_s1 + $0x38] sm:$0xff] (!%p140_p2)   ;;  %vm711_vm2 = vcmask (!%p140_p2), 1041408   ;;  %v1456_v11 = vmov (!%p140_p2), 65535   ;;  %v1349_v13 = vld [vmem:[%s1829_s1 + $0x40] sm:$0xff] (!%p140_p2)   ;;  %vm1070_vm3 = vcmask (!%p140_p2), 523264  }
   0x8   : > { %719 = vmatprep.subr.bf16.mxu0 (!%p140_p2), %v1455_v1  ;;  %1312 = vmatprep.subr.bf16.mxu1 (!%p140_p2), %v1455_v1  ;;  %v712_v12 = vsel (!%p140_p2), %vm710_vm1, 4294967295, %v1456_v11  ;;  %v1350_v14 = vld [vmem:[%s1829_s1 + $0x48] ss:$0 sps:$4 sm:$0x33] (!%p140_p2)  }
   0x9   : > { %v713_v15 = vsel (!%p140_p2), %vm711_vm2, %v712_v12, 0 }
   0xa   : > { %v715_v16 = vand.u32 (!%p140_p2), %v1350_v14, %v713_v15  ;;  %v1624_v15 = vld [vmem:[%s1830_s2] ss:$0 sm:$0xff] (!%p140_p2) }
   0xb   : > { %720 = vmatpush1.bf16.msra.mxu0 (!%p140_p2), %v1342_v2  ;;  %1322 = vmatpush1.bf16.msra.mxu1 (!%p140_p2), %v1342_v2 }
   0xc   : > { %721 = vmatprep.subr.bf16.mxu0 (!%p140_p2), %v1455_v1  ;;  %1313 = vmatprep.subr.bf16.mxu1 (!%p140_p2), %v1455_v1 }
   0xd   : > { %s1833_s20 = smov (!%p165_p3, %s1196_s20), 255 }
   0xe   : > { %s1310_s23 = sshll.u32 %s1833_s20, 3 }
   0xf   : > { %722 = vmatpush1.bf16.msra.mxu0 %v1343_v3  ;;  %1323 = vmatpush1.bf16.msra.mxu1 %v1343_v3  ;;  %s1505_s26 = scalar_lea.vmem %s1828_s0, %s1310_s23  ;;  %s1633_s17 = scalar_lea.vmem %s1831_s3, %s1310_s23 }
  0x10   : > { %723 = vmatprep.subr.bf16.mxu0 %v1455_v1  ;;  %1314 = vmatprep.subr.bf16.mxu1 %v1455_v1  ;;  %v1353_v6 = vld [vmem:[%s1505_s26 + $0x4] ss:$8 sps:$4 sm:$0xff]   ;;  %v1351_v17 = vld [vmem:[%s1505_s26] ss:$8 sps:$4 sm:$0xff]   ;;  %v1357_v19 = vld [vmem:[%s1505_s26 + $0x14] ss:$8 sps:$4 sm:$0xff]  }
  0x11   : > { %v1356_v7 = vld [vmem:[%s1505_s26 + $0x104] ss:$8 sps:$4 sm:$0xff]   ;;  %1276 = vmatprep.mubr.msk.bf16.mxu0 %vm613_vm0, %v1353_v6  ;;  %v1354_v18 = vld [vmem:[%s1505_s26 + $0x100] ss:$8 sps:$4 sm:$0xff]   ;;  %v1359_v20 = vld [vmem:[%s1505_s26 + $0x114] ss:$8 sps:$4 sm:$0xff]  }
  0x12   : > { %1292 = vmatprep.mubr.msk.bf16.mxu1 %vm613_vm0, %v1356_v7  ;;  %v1361_v21 = vld [vmem:[%s1505_s26 + $0x10] ss:$8 sps:$4 sm:$0xff]   ;;  %v1363_v23 = vld [vmem:[%s1505_s26 + $0x24] ss:$8 sps:$4 sm:$0xff]   ;;  %v1367_v25 = vld [vmem:[%s1505_s26 + $0x20] ss:$8 sps:$4 sm:$0xff]  }
  0x13   : > { %724 = vmatpush1.bf16.msra.mxu0 %v1344_v4  ;;  %1324 = vmatpush1.bf16.msra.mxu1 %v1344_v4  ;;  %v1362_v22 = vld [vmem:[%s1505_s26 + $0x110] ss:$8 sps:$4 sm:$0xff]   ;;  %v1365_v24 = vld [vmem:[%s1505_s26 + $0x124] ss:$8 sps:$4 sm:$0xff]   ;;  %v1368_v26 = vld [vmem:[%s1505_s26 + $0x120] ss:$8 sps:$4 sm:$0xff]  }
  0x14   : > { %725 = vmatprep.subr.bf16.mxu0 %v1455_v1  ;;  %1315 = vmatprep.subr.bf16.mxu1 %v1455_v1  ;;  %v1369_v27 = vld [vmem:[%s1505_s26 + $0x34] ss:$8 sps:$4 sm:$0xff]   ;;  %v1373_v29 = vld [vmem:[%s1505_s26 + $0x30] ss:$8 sps:$4 sm:$0xff]   ;;  %v1375_v31 = vld [vmem:[%s1505_s26 + $0x44] ss:$8 sps:$4 sm:$0xff]  }
  0x15   : > { %v1371_v28 = vld [vmem:[%s1505_s26 + $0x134] ss:$8 sps:$4 sm:$0xff]   ;;  %v1374_v30 = vld [vmem:[%s1505_s26 + $0x130] ss:$8 sps:$4 sm:$0xff]   ;;  %v1377_v32 = vld [vmem:[%s1505_s26 + $0x144] ss:$8 sps:$4 sm:$0xff]  }
  0x16   : > { %v1379_v33 = vld [vmem:[%s1505_s26 + $0x40] ss:$8 sps:$4 sm:$0xff]   ;;  %v1381_v35 = vld [vmem:[%s1505_s26 + $0x54] ss:$8 sps:$4 sm:$0xff]   ;;  %v1385_v37 = vld [vmem:[%s1505_s26 + $0x50] ss:$8 sps:$4 sm:$0xff]  }
  0x17   : > { %726 = vmatpush1.bf16.msra.mxu0 %v1345_v5  ;;  %1325 = vmatpush1.bf16.msra.mxu1 %v1345_v5  ;;  %v1380_v34 = vld [vmem:[%s1505_s26 + $0x140] ss:$8 sps:$4 sm:$0xff]   ;;  %v1383_v36 = vld [vmem:[%s1505_s26 + $0x154] ss:$8 sps:$4 sm:$0xff]   ;;  %v1386_v38 = vld [vmem:[%s1505_s26 + $0x150] ss:$8 sps:$4 sm:$0xff]  }
  0x18   : > { %727 = vmatprep.subr.bf16.mxu0 %v1455_v1  ;;  %1316 = vmatprep.subr.bf16.mxu1 %v1455_v1  ;;  %v1387_v39 = vld [vmem:[%s1505_s26 + $0x64] ss:$8 sps:$4 sm:$0xff]   ;;  %v1391_v41 = vld [vmem:[%s1505_s26 + $0x60] ss:$8 sps:$4 sm:$0xff]   ;;  %v1393_v43 = vld [vmem:[%s1505_s26 + $0x74] ss:$8 sps:$4 sm:$0xff]  }
  0x19   : > { %v1389_v40 = vld [vmem:[%s1505_s26 + $0x164] ss:$8 sps:$4 sm:$0xff]   ;;  %v1392_v42 = vld [vmem:[%s1505_s26 + $0x160] ss:$8 sps:$4 sm:$0xff]   ;;  %v1395_v44 = vld [vmem:[%s1505_s26 + $0x174] ss:$8 sps:$4 sm:$0xff]  }
  0x1a   : > { %v1397_v45 = vld [vmem:[%s1505_s26 + $0x70] ss:$8 sps:$4 sm:$0xff]   ;;  %v1399_v47 = vld [vmem:[%s1505_s26 + $0x84] ss:$8 sps:$4 sm:$0xff]   ;;  %v1403_v49 = vld [vmem:[%s1505_s26 + $0x80] ss:$8 sps:$4 sm:$0xff]  }
  0x1b   : > { %728 = vmatpush1.bf16.msra.mxu0 %v1346_v8  ;;  %1326 = vmatpush1.bf16.msra.mxu1 %v1346_v8  ;;  %v1398_v46 = vld [vmem:[%s1505_s26 + $0x170] ss:$8 sps:$4 sm:$0xff]   ;;  %v1401_v48 = vld [vmem:[%s1505_s26 + $0x184] ss:$8 sps:$4 sm:$0xff]   ;;  %v1404_v50 = vld [vmem:[%s1505_s26 + $0x180] ss:$8 sps:$4 sm:$0xff]  }
  0x1c   : > { %729 = vmatprep.subr.bf16.mxu0 %v1455_v1  ;;  %1317 = vmatprep.subr.bf16.mxu1 %v1455_v1  ;;  %v1405_v51 = vld [vmem:[%s1505_s26 + $0x94] ss:$8 sps:$4 sm:$0xff]   ;;  %v1409_v53 = vld [vmem:[%s1505_s26 + $0x90] ss:$8 sps:$4 sm:$0xff]   ;;  %v1411_v55 = vld [vmem:[%s1505_s26 + $0xa4] ss:$8 sps:$4 sm:$0xff]  }
  0x1d   : > { %v1407_v52 = vld [vmem:[%s1505_s26 + $0x194] ss:$8 sps:$4 sm:$0xff]   ;;  %v1410_v54 = vld [vmem:[%s1505_s26 + $0x190] ss:$8 sps:$4 sm:$0xff]   ;;  %v1413_v56 = vld [vmem:[%s1505_s26 + $0x1a4] ss:$8 sps:$4 sm:$0xff]  }
  0x1e   : > { %v1415_v57 = vld [vmem:[%s1505_s26 + $0xa0] ss:$8 sps:$4 sm:$0xff]   ;;  %v1417_v59 = vld [vmem:[%s1505_s26 + $0xb4] ss:$8 sps:$4 sm:$0xff]   ;;  %v1421_v61 = vld [vmem:[%s1505_s26 + $0xb0] ss:$8 sps:$4 sm:$0xff]  }
  0x1f   : > { %730 = vmatpush1.bf16.msra.mxu0 %v1347_v9  ;;  %1327 = vmatpush1.bf16.msra.mxu1 %v1347_v9  ;;  %v1416_v58 = vld [vmem:[%s1505_s26 + $0x1a0] ss:$8 sps:$4 sm:$0xff]   ;;  %v1419_v60 = vld [vmem:[%s1505_s26 + $0x1b4] ss:$8 sps:$4 sm:$0xff]   ;;  %v1422_v62 = vld [vmem:[%s1505_s26 + $0x1b0] ss:$8 sps:$4 sm:$0xff]  }
  0x20   : > { %731 = vmatprep.subr.bf16.mxu0 %v1455_v1  ;;  %1318 = vmatprep.subr.bf16.mxu1 %v1455_v1  ;;  %v1423_v63 = vld [vmem:[%s1505_s26 + $0xc4] ss:$8 sps:$4 sm:$0xff]   ;;  %v1428_v2 = vld [vmem:[%s1505_s26 + $0x1c0] ss:$8 sps:$4 sm:$0xff]   ;;  %v1429_v3 = vld [vmem:[%s1505_s26 + $0xd4] ss:$8 sps:$4 sm:$0xff]  }
  0x21   : > { %v1425_v0 = vld [vmem:[%s1505_s26 + $0x1c4] ss:$8 sps:$4 sm:$0xff]   ;;  %v1431_v4 = vld [vmem:[%s1505_s26 + $0x1d4] ss:$8 sps:$4 sm:$0xff]   ;;  %v1433_v5 = vld [vmem:[%s1505_s26 + $0xd0] ss:$8 sps:$4 sm:$0xff]  }
  0x22   : > { %v1434_v6 = vld [vmem:[%s1505_s26 + $0x1d0] ss:$8 sps:$4 sm:$0xff]   ;;  %v1435_v7 = vld [vmem:[%s1505_s26 + $0xe4] ss:$8 sps:$4 sm:$0xff]   ;;  %v1439_v9 = vld [vmem:[%s1505_s26 + $0xe0] ss:$8 sps:$4 sm:$0xff]  }
  0x23   : > { %732 = vmatpush1.bf16.msra.mxu0 %v1348_v10  ;;  %1328 = vmatpush1.bf16.msra.mxu1 %v1348_v10  ;;  %v1437_v8 = vld [vmem:[%s1505_s26 + $0x1e4] ss:$8 sps:$4 sm:$0xff]   ;;  %v1440_v10 = vld [vmem:[%s1505_s26 + $0x1e0] ss:$8 sps:$4 sm:$0xff]   ;;  %v1441_v11 = vld [vmem:[%s1505_s26 + $0xf4] ss:$8 sps:$4 sm:$0xff]  }
  0x24   : > { %733 = vmatprep.subr.bf16.mxu0 %v1455_v1  ;;  %1319 = vmatprep.subr.bf16.mxu1 %v1455_v1  ;;  %v1443_v12 = vld [vmem:[%s1505_s26 + $0x1f4] ss:$8 sps:$4 sm:$0xff]   ;;  %v1446_v14 = vld [vmem:[%s1505_s26 + $0x1f0] ss:$8 sps:$4 sm:$0xff]  }
  0x27   : > { %734 = vmatpush1.bf16.msra.mxu0 %v1349_v13  ;;  %1329 = vmatpush1.bf16.msra.mxu1 %v1349_v13  ;;  %v1445_v13 = vld [vmem:[%s1505_s26 + $0xf0] ss:$8 sps:$4 sm:$0xff]  }
  0x28   : > { %735 = vmatprep.subr.bf16.mxu0 %v1455_v1  ;;  %1320 = vmatprep.subr.bf16.mxu1 %v1455_v1  ;;  %v1427_v1 = vld [vmem:[%s1505_s26 + $0xc0] ss:$8 sps:$4 sm:$0xff]  }
  0x2b   : > { %736 = vmatpush1.bf16.msra.mxu0 %v715_v16  ;;  %1330 = vmatpush1.bf16.msra.mxu1 %v715_v16 }
  0x2e   : > { %750 = vmatmul.mubr.bf16.vlgmr.msra.gmra.mrb[0].mxu0 %v1351_v17  ;;  %878 = vmatmul.mubr.bf16.vlgmr.msra.gmra.mrb[0].mxu1 %v1354_v18 }
  0x2f   : > { %1277 = vmatprep.mubr.msk.bf16.mxu0 %vm613_vm0, %v1357_v19  ;;  %1293 = vmatprep.mubr.msk.bf16.mxu1 %vm613_vm0, %v1359_v20 }
  0x36   : > { %758 = vmatmul.mubr.bf16.gmra.mrb[4].mxu0 %v1361_v21  ;;  %886 = vmatmul.mubr.bf16.gmra.mrb[4].mxu1 %v1362_v22 }
  0x37   : > { %1278 = vmatprep.mubr.msk.bf16.mxu0 %vm613_vm0, %v1363_v23  ;;  %1294 = vmatprep.mubr.msk.bf16.mxu1 %vm613_vm0, %v1365_v24 }
  0x3e   : > { %766 = vmatmul.mubr.bf16.gmra.mrb[8].mxu0 %v1367_v25  ;;  %894 = vmatmul.mubr.bf16.gmra.mrb[8].mxu1 %v1368_v26 }
  0x3f   : > { %1279 = vmatprep.mubr.msk.bf16.mxu0 %vm613_vm0, %v1369_v27  ;;  %1295 = vmatprep.mubr.msk.bf16.mxu1 %vm613_vm0, %v1371_v28 }
  0x46   : > { %774 = vmatmul.mubr.bf16.gmra.mrb[12].mxu0 %v1373_v29  ;;  %902 = vmatmul.mubr.bf16.gmra.mrb[12].mxu1 %v1374_v30 }
  0x47   : > { %1280 = vmatprep.mubr.msk.bf16.mxu0 %vm613_vm0, %v1375_v31  ;;  %1296 = vmatprep.mubr.msk.bf16.mxu1 %vm613_vm0, %v1377_v32 }
  0x4e   : > { %782 = vmatmul.mubr.bf16.gmra.mrb[16].mxu0 %v1379_v33  ;;  %910 = vmatmul.mubr.bf16.gmra.mrb[16].mxu1 %v1380_v34 }
  0x4f   : > { %1281 = vmatprep.mubr.msk.bf16.mxu0 %vm613_vm0, %v1381_v35  ;;  %1297 = vmatprep.mubr.msk.bf16.mxu1 %vm613_vm0, %v1383_v36 }
  0x56   : > { %790 = vmatmul.mubr.bf16.gmra.mrb[20].mxu0 %v1385_v37  ;;  %918 = vmatmul.mubr.bf16.gmra.mrb[20].mxu1 %v1386_v38 }
  0x57   : > { %1282 = vmatprep.mubr.msk.bf16.mxu0 %vm613_vm0, %v1387_v39  ;;  %1298 = vmatprep.mubr.msk.bf16.mxu1 %vm613_vm0, %v1389_v40 }
  0x5e   : > { %798 = vmatmul.mubr.bf16.gmra.mrb[24].mxu0 %v1391_v41  ;;  %926 = vmatmul.mubr.bf16.gmra.mrb[24].mxu1 %v1392_v42 }
  0x5f   : > { %1283 = vmatprep.mubr.msk.bf16.mxu0 %vm613_vm0, %v1393_v43  ;;  %1299 = vmatprep.mubr.msk.bf16.mxu1 %vm613_vm0, %v1395_v44 }
  0x66   : > { %806 = vmatmul.mubr.bf16.gmra.mrb[28].mxu0 %v1397_v45  ;;  %934 = vmatmul.mubr.bf16.gmra.mrb[28].mxu1 %v1398_v46 }
  0x67   : > { %1284 = vmatprep.mubr.msk.bf16.mxu0 %vm613_vm0, %v1399_v47  ;;  %1300 = vmatprep.mubr.msk.bf16.mxu1 %vm613_vm0, %v1401_v48 }
  0x6e   : > { %814 = vmatmul.mubr.bf16.gmra.mrb[32].mxu0 %v1403_v49  ;;  %942 = vmatmul.mubr.bf16.gmra.mrb[32].mxu1 %v1404_v50 }
  0x6f   : > { %1285 = vmatprep.mubr.msk.bf16.mxu0 %vm613_vm0, %v1405_v51  ;;  %1301 = vmatprep.mubr.msk.bf16.mxu1 %vm613_vm0, %v1407_v52 }
  0x76   : > { %822 = vmatmul.mubr.bf16.gmra.mrb[36].mxu0 %v1409_v53  ;;  %950 = vmatmul.mubr.bf16.gmra.mrb[36].mxu1 %v1410_v54 }
  0x77   : > { %1286 = vmatprep.mubr.msk.bf16.mxu0 %vm613_vm0, %v1411_v55  ;;  %1302 = vmatprep.mubr.msk.bf16.mxu1 %vm613_vm0, %v1413_v56 }
  0x7e   : > { %830 = vmatmul.mubr.bf16.gmra.mrb[40].mxu0 %v1415_v57  ;;  %958 = vmatmul.mubr.bf16.gmra.mrb[40].mxu1 %v1416_v58 }
  0x7f   : > { %1287 = vmatprep.mubr.msk.bf16.mxu0 %vm613_vm0, %v1417_v59  ;;  %1303 = vmatprep.mubr.msk.bf16.mxu1 %vm613_vm0, %v1419_v60 }
  0x86   : > { %838 = vmatmul.mubr.bf16.gmra.mrb[44].mxu0 %v1421_v61  ;;  %966 = vmatmul.mubr.bf16.gmra.mrb[44].mxu1 %v1422_v62 }
  0x87   : > { %1288 = vmatprep.mubr.msk.bf16.mxu0 %vm613_vm0, %v1423_v63  ;;  %1304 = vmatprep.mubr.msk.bf16.mxu1 %vm613_vm0, %v1425_v0 }
  0x8e   : > { %846 = vmatmul.mubr.bf16.gmra.mrb[48].mxu0 %v1427_v1  ;;  %974 = vmatmul.mubr.bf16.gmra.mrb[48].mxu1 %v1428_v2 }
  0x8f   : > { %1289 = vmatprep.mubr.msk.bf16.mxu0 %vm613_vm0, %v1429_v3  ;;  %1305 = vmatprep.mubr.msk.bf16.mxu1 %vm613_vm0, %v1431_v4 }
  0x96   : > { %854 = vmatmul.mubr.bf16.gmra.mrb[52].mxu0 %v1433_v5  ;;  %982 = vmatmul.mubr.bf16.gmra.mrb[52].mxu1 %v1434_v6 }
  0x97   : > { %1290 = vmatprep.mubr.msk.bf16.mxu0 %vm613_vm0, %v1435_v7  ;;  %1306 = vmatprep.mubr.msk.bf16.mxu1 %vm613_vm0, %v1437_v8 }
  0x9e   : > { %862 = vmatmul.mubr.bf16.gmra.mrb[56].mxu0 %v1439_v9  ;;  %990 = vmatmul.mubr.bf16.gmra.mrb[56].mxu1 %v1440_v10 }
  0x9f   : > { %1291 = vmatprep.mubr.msk.bf16.mxu0 %vm613_vm0, %v1441_v11  ;;  %1307 = vmatprep.mubr.msk.bf16.mxu1 %vm613_vm0, %v1443_v12 }
  0xa6   : > { %870 = vmatmul.mubr.bf16.gmra.mrb[60].mxu0 %v1445_v13  ;;  %998 = vmatmul.mubr.bf16.gmra.mrb[60].mxu1 %v1446_v14 }
 0x101   : > { %v751_v16 = vpop.f32.mrb[0].mxu0  ;;  %v879_v17 = vpop.f32.mrb[0].mxu1 }
 0x102   : > { %v752_v18 = vadd.f32 %v1624_v15, %v751_v16  ;;  %v880_v19 = vadd.f32 %v1624_v15, %v879_v17  ;;  %v753_v20 = vpop.f32.mrb[1].mxu0  ;;  %v881_v21 = vpop.f32.mrb[1].mxu1 }
 0x103   : > { %v754_v22 = vpop.f32.mrb[2].mxu0  ;;  %v882_v23 = vpop.f32.mrb[2].mxu1 }
 0x104   : > { %v1006_v24 = vmax.f32 %v752_v18, 0.0  ;;  %v1038_v25 = vmax.f32 %v880_v19, 0.0  ;;  %v755_v26 = vadd.f32 %v1624_v15, %v754_v22  ;;  %v883_v27 = vadd.f32 %v1624_v15, %v882_v23  ;;  %v756_v28 = vpop.f32.mrb[3].mxu0  ;;  %v884_v29 = vpop.f32.mrb[3].mxu1 }
 0x106   : > { %1071 = vst.msk [vmem:[%s1633_s17] sm:$0xff] %vm1070_vm3, %v1006_v24  ;;  %1103 = vst.msk [vmem:[%s1633_s17 + $0x100] sm:$0xff] %vm1070_vm3, %v1038_v25  ;;  %v1007_v30 = vmax.f32 %v755_v26, 0.0  ;;  %v1039_v31 = vmax.f32 %v883_v27, 0.0 }
 0x108   : > { %1072 = vst.msk [vmem:[%s1633_s17 + $0x8] sm:$0xff] %vm1070_vm3, %v1007_v30  ;;  %1104 = vst.msk [vmem:[%s1633_s17 + $0x108] sm:$0xff] %vm1070_vm3, %v1039_v31 }
 0x109   : > { %v759_v32 = vpop.f32.mrb[4].mxu0  ;;  %v887_v33 = vpop.f32.mrb[4].mxu1 }
 0x10a   : > { %v760_v34 = vadd.f32 %v1624_v15, %v759_v32  ;;  %v888_v35 = vadd.f32 %v1624_v15, %v887_v33  ;;  %v761_v36 = vpop.f32.mrb[5].mxu0  ;;  %v889_v37 = vpop.f32.mrb[5].mxu1 }
 0x10b   : > { %v762_v38 = vpop.f32.mrb[6].mxu0  ;;  %v890_v39 = vpop.f32.mrb[6].mxu1 }
 0x10c   : > { %v1008_v40 = vmax.f32 %v760_v34, 0.0  ;;  %v1040_v41 = vmax.f32 %v888_v35, 0.0  ;;  %v763_v42 = vadd.f32 %v1624_v15, %v762_v38  ;;  %v891_v43 = vadd.f32 %v1624_v15, %v890_v39  ;;  %v764_v44 = vpop.f32.mrb[7].mxu0  ;;  %v892_v45 = vpop.f32.mrb[7].mxu1 }
 0x10e   : > { %1073 = vst.msk [vmem:[%s1633_s17 + $0x10] sm:$0xff] %vm1070_vm3, %v1008_v40  ;;  %1105 = vst.msk [vmem:[%s1633_s17 + $0x110] sm:$0xff] %vm1070_vm3, %v1040_v41  ;;  %v1009_v46 = vmax.f32 %v763_v42, 0.0  ;;  %v1041_v47 = vmax.f32 %v891_v43, 0.0 }
 0x110   : > { %1074 = vst.msk [vmem:[%s1633_s17 + $0x18] sm:$0xff] %vm1070_vm3, %v1009_v46  ;;  %1106 = vst.msk [vmem:[%s1633_s17 + $0x118] sm:$0xff] %vm1070_vm3, %v1041_v47 }
 0x111   : > { %v767_v48 = vpop.f32.mrb[8].mxu0  ;;  %v895_v49 = vpop.f32.mrb[8].mxu1 }
 0x112   : > { %v768_v50 = vadd.f32 %v1624_v15, %v767_v48  ;;  %v896_v51 = vadd.f32 %v1624_v15, %v895_v49  ;;  %v769_v52 = vpop.f32.mrb[9].mxu0  ;;  %v897_v53 = vpop.f32.mrb[9].mxu1 }
 0x113   : > { %v770_v54 = vpop.f32.mrb[10].mxu0  ;;  %v898_v55 = vpop.f32.mrb[10].mxu1 }
 0x114   : > { %v1010_v56 = vmax.f32 %v768_v50, 0.0  ;;  %v1042_v57 = vmax.f32 %v896_v51, 0.0  ;;  %v771_v58 = vadd.f32 %v1624_v15, %v770_v54  ;;  %v899_v59 = vadd.f32 %v1624_v15, %v898_v55  ;;  %v772_v60 = vpop.f32.mrb[11].mxu0  ;;  %v900_v61 = vpop.f32.mrb[11].mxu1 }
 0x116   : > { %1075 = vst.msk [vmem:[%s1633_s17 + $0x20] sm:$0xff] %vm1070_vm3, %v1010_v56  ;;  %1107 = vst.msk [vmem:[%s1633_s17 + $0x120] sm:$0xff] %vm1070_vm3, %v1042_v57  ;;  %v1011_v62 = vmax.f32 %v771_v58, 0.0  ;;  %v1043_v63 = vmax.f32 %v899_v59, 0.0 }
 0x118   : > { %1076 = vst.msk [vmem:[%s1633_s17 + $0x28] sm:$0xff] %vm1070_vm3, %v1011_v62  ;;  %1108 = vst.msk [vmem:[%s1633_s17 + $0x128] sm:$0xff] %vm1070_vm3, %v1043_v63 }
 0x119   : > { %v775_v0 = vpop.f32.mrb[12].mxu0  ;;  %v903_v1 = vpop.f32.mrb[12].mxu1 }
 0x11a   : > { %v776_v2 = vadd.f32 %v1624_v15, %v775_v0  ;;  %v904_v3 = vadd.f32 %v1624_v15, %v903_v1  ;;  %v777_v4 = vpop.f32.mrb[13].mxu0  ;;  %v905_v5 = vpop.f32.mrb[13].mxu1 }
 0x11b   : > { %v778_v6 = vpop.f32.mrb[14].mxu0  ;;  %v906_v7 = vpop.f32.mrb[14].mxu1 }
 0x11c   : > { %v1012_v8 = vmax.f32 %v776_v2, 0.0  ;;  %v1044_v9 = vmax.f32 %v904_v3, 0.0  ;;  %v779_v10 = vadd.f32 %v1624_v15, %v778_v6  ;;  %v907_v11 = vadd.f32 %v1624_v15, %v906_v7  ;;  %v780_v12 = vpop.f32.mrb[15].mxu0  ;;  %v908_v13 = vpop.f32.mrb[15].mxu1 }
 0x11e   : > { %1077 = vst.msk [vmem:[%s1633_s17 + $0x30] sm:$0xff] %vm1070_vm3, %v1012_v8  ;;  %1109 = vst.msk [vmem:[%s1633_s17 + $0x130] sm:$0xff] %vm1070_vm3, %v1044_v9  ;;  %v1013_v14 = vmax.f32 %v779_v10, 0.0  ;;  %v1045_v16 = vmax.f32 %v907_v11, 0.0 }
 0x120   : > { %1078 = vst.msk [vmem:[%s1633_s17 + $0x38] sm:$0xff] %vm1070_vm3, %v1013_v14  ;;  %1110 = vst.msk [vmem:[%s1633_s17 + $0x138] sm:$0xff] %vm1070_vm3, %v1045_v16 }
 0x121   : > { %v783_v17 = vpop.f32.mrb[16].mxu0  ;;  %v911_v18 = vpop.f32.mrb[16].mxu1 }
 0x122   : > { %v784_v19 = vadd.f32 %v1624_v15, %v783_v17  ;;  %v912_v20 = vadd.f32 %v1624_v15, %v911_v18  ;;  %v785_v21 = vpop.f32.mrb[17].mxu0  ;;  %v913_v22 = vpop.f32.mrb[17].mxu1 }
 0x123   : > { %v786_v23 = vpop.f32.mrb[18].mxu0  ;;  %v914_v24 = vpop.f32.mrb[18].mxu1 }
 0x124   : > { %v1014_v25 = vmax.f32 %v784_v19, 0.0  ;;  %v1046_v26 = vmax.f32 %v912_v20, 0.0  ;;  %v787_v27 = vadd.f32 %v1624_v15, %v786_v23  ;;  %v915_v28 = vadd.f32 %v1624_v15, %v914_v24  ;;  %v788_v29 = vpop.f32.mrb[19].mxu0  ;;  %v916_v30 = vpop.f32.mrb[19].mxu1 }
 0x126   : > { %1079 = vst.msk [vmem:[%s1633_s17 + $0x40] sm:$0xff] %vm1070_vm3, %v1014_v25  ;;  %1111 = vst.msk [vmem:[%s1633_s17 + $0x140] sm:$0xff] %vm1070_vm3, %v1046_v26  ;;  %v1015_v31 = vmax.f32 %v787_v27, 0.0  ;;  %v1047_v32 = vmax.f32 %v915_v28, 0.0 }
 0x128   : > { %1080 = vst.msk [vmem:[%s1633_s17 + $0x48] sm:$0xff] %vm1070_vm3, %v1015_v31  ;;  %1112 = vst.msk [vmem:[%s1633_s17 + $0x148] sm:$0xff] %vm1070_vm3, %v1047_v32 }
 0x129   : > { %v791_v33 = vpop.f32.mrb[20].mxu0  ;;  %v919_v34 = vpop.f32.mrb[20].mxu1 }
 0x12a   : > { %v792_v35 = vadd.f32 %v1624_v15, %v791_v33  ;;  %v920_v36 = vadd.f32 %v1624_v15, %v919_v34  ;;  %v793_v37 = vpop.f32.mrb[21].mxu0  ;;  %v921_v38 = vpop.f32.mrb[21].mxu1 }
 0x12b   : > { %v794_v39 = vpop.f32.mrb[22].mxu0  ;;  %v922_v40 = vpop.f32.mrb[22].mxu1 }
 0x12c   : > { %v1016_v41 = vmax.f32 %v792_v35, 0.0  ;;  %v1048_v42 = vmax.f32 %v920_v36, 0.0  ;;  %v795_v43 = vadd.f32 %v1624_v15, %v794_v39  ;;  %v923_v44 = vadd.f32 %v1624_v15, %v922_v40  ;;  %v796_v45 = vpop.f32.mrb[23].mxu0  ;;  %v924_v46 = vpop.f32.mrb[23].mxu1 }
 0x12e   : > { %1081 = vst.msk [vmem:[%s1633_s17 + $0x50] sm:$0xff] %vm1070_vm3, %v1016_v41  ;;  %1113 = vst.msk [vmem:[%s1633_s17 + $0x150] sm:$0xff] %vm1070_vm3, %v1048_v42  ;;  %v1017_v47 = vmax.f32 %v795_v43, 0.0  ;;  %v1049_v48 = vmax.f32 %v923_v44, 0.0 }
 0x130   : > { %1082 = vst.msk [vmem:[%s1633_s17 + $0x58] sm:$0xff] %vm1070_vm3, %v1017_v47  ;;  %1114 = vst.msk [vmem:[%s1633_s17 + $0x158] sm:$0xff] %vm1070_vm3, %v1049_v48 }
 0x131   : > { %v799_v49 = vpop.f32.mrb[24].mxu0  ;;  %v927_v50 = vpop.f32.mrb[24].mxu1 }
 0x132   : > { %v800_v51 = vadd.f32 %v1624_v15, %v799_v49  ;;  %v928_v52 = vadd.f32 %v1624_v15, %v927_v50  ;;  %v801_v53 = vpop.f32.mrb[25].mxu0  ;;  %v929_v54 = vpop.f32.mrb[25].mxu1 }
 0x133   : > { %v802_v55 = vpop.f32.mrb[26].mxu0  ;;  %v930_v56 = vpop.f32.mrb[26].mxu1 }
 0x134   : > { %v1018_v57 = vmax.f32 %v800_v51, 0.0  ;;  %v1050_v58 = vmax.f32 %v928_v52, 0.0  ;;  %v803_v59 = vadd.f32 %v1624_v15, %v802_v55  ;;  %v931_v60 = vadd.f32 %v1624_v15, %v930_v56  ;;  %v804_v61 = vpop.f32.mrb[27].mxu0  ;;  %v932_v62 = vpop.f32.mrb[27].mxu1 }
 0x136   : > { %1083 = vst.msk [vmem:[%s1633_s17 + $0x60] sm:$0xff] %vm1070_vm3, %v1018_v57  ;;  %1115 = vst.msk [vmem:[%s1633_s17 + $0x160] sm:$0xff] %vm1070_vm3, %v1050_v58  ;;  %v1019_v63 = vmax.f32 %v803_v59, 0.0  ;;  %v1051_v0 = vmax.f32 %v931_v60, 0.0 }
 0x138   : > { %1084 = vst.msk [vmem:[%s1633_s17 + $0x68] sm:$0xff] %vm1070_vm3, %v1019_v63  ;;  %1116 = vst.msk [vmem:[%s1633_s17 + $0x168] sm:$0xff] %vm1070_vm3, %v1051_v0 }
 0x139   : > { %v807_v1 = vpop.f32.mrb[28].mxu0  ;;  %v935_v2 = vpop.f32.mrb[28].mxu1 }
 0x13a   : > { %v808_v3 = vadd.f32 %v1624_v15, %v807_v1  ;;  %v936_v4 = vadd.f32 %v1624_v15, %v935_v2  ;;  %v809_v5 = vpop.f32.mrb[29].mxu0  ;;  %v937_v6 = vpop.f32.mrb[29].mxu1 }
 0x13b   : > { %v810_v7 = vpop.f32.mrb[30].mxu0  ;;  %v938_v8 = vpop.f32.mrb[30].mxu1 }
 0x13c   : > { %v1020_v9 = vmax.f32 %v808_v3, 0.0  ;;  %v1052_v10 = vmax.f32 %v936_v4, 0.0  ;;  %v811_v11 = vadd.f32 %v1624_v15, %v810_v7  ;;  %v939_v12 = vadd.f32 %v1624_v15, %v938_v8  ;;  %v812_v13 = vpop.f32.mrb[31].mxu0  ;;  %v940_v14 = vpop.f32.mrb[31].mxu1 }
 0x13e   : > { %1085 = vst.msk [vmem:[%s1633_s17 + $0x70] sm:$0xff] %vm1070_vm3, %v1020_v9  ;;  %1117 = vst.msk [vmem:[%s1633_s17 + $0x170] sm:$0xff] %vm1070_vm3, %v1052_v10  ;;  %v1021_v16 = vmax.f32 %v811_v11, 0.0  ;;  %v1053_v17 = vmax.f32 %v939_v12, 0.0 }
 0x140   : > { %1086 = vst.msk [vmem:[%s1633_s17 + $0x78] sm:$0xff] %vm1070_vm3, %v1021_v16  ;;  %1118 = vst.msk [vmem:[%s1633_s17 + $0x178] sm:$0xff] %vm1070_vm3, %v1053_v17 }
 0x141   : > { %v815_v18 = vpop.f32.mrb[32].mxu0  ;;  %v943_v19 = vpop.f32.mrb[32].mxu1 }
 0x142   : > { %v816_v20 = vadd.f32 %v1624_v15, %v815_v18  ;;  %v944_v21 = vadd.f32 %v1624_v15, %v943_v19  ;;  %v817_v22 = vpop.f32.mrb[33].mxu0  ;;  %v945_v23 = vpop.f32.mrb[33].mxu1 }
 0x143   : > { %v818_v24 = vpop.f32.mrb[34].mxu0  ;;  %v946_v25 = vpop.f32.mrb[34].mxu1 }
 0x144   : > { %v1022_v26 = vmax.f32 %v816_v20, 0.0  ;;  %v1054_v27 = vmax.f32 %v944_v21, 0.0  ;;  %v819_v28 = vadd.f32 %v1624_v15, %v818_v24  ;;  %v947_v29 = vadd.f32 %v1624_v15, %v946_v25  ;;  %v820_v30 = vpop.f32.mrb[35].mxu0  ;;  %v948_v31 = vpop.f32.mrb[35].mxu1 }
 0x146   : > { %1087 = vst.msk [vmem:[%s1633_s17 + $0x80] sm:$0xff] %vm1070_vm3, %v1022_v26  ;;  %1119 = vst.msk [vmem:[%s1633_s17 + $0x180] sm:$0xff] %vm1070_vm3, %v1054_v27  ;;  %v1023_v32 = vmax.f32 %v819_v28, 0.0  ;;  %v1055_v33 = vmax.f32 %v947_v29, 0.0 }
 0x148   : > { %1088 = vst.msk [vmem:[%s1633_s17 + $0x88] sm:$0xff] %vm1070_vm3, %v1023_v32  ;;  %1120 = vst.msk [vmem:[%s1633_s17 + $0x188] sm:$0xff] %vm1070_vm3, %v1055_v33 }
 0x149   : > { %v823_v34 = vpop.f32.mrb[36].mxu0  ;;  %v951_v35 = vpop.f32.mrb[36].mxu1 }
 0x14a   : > { %v824_v36 = vadd.f32 %v1624_v15, %v823_v34  ;;  %v952_v37 = vadd.f32 %v1624_v15, %v951_v35  ;;  %v825_v38 = vpop.f32.mrb[37].mxu0  ;;  %v953_v39 = vpop.f32.mrb[37].mxu1 }
 0x14b   : > { %v826_v40 = vpop.f32.mrb[38].mxu0  ;;  %v954_v41 = vpop.f32.mrb[38].mxu1 }
 0x14c   : > { %v1024_v42 = vmax.f32 %v824_v36, 0.0  ;;  %v1056_v43 = vmax.f32 %v952_v37, 0.0  ;;  %v827_v44 = vadd.f32 %v1624_v15, %v826_v40  ;;  %v955_v45 = vadd.f32 %v1624_v15, %v954_v41  ;;  %v828_v46 = vpop.f32.mrb[39].mxu0  ;;  %v956_v47 = vpop.f32.mrb[39].mxu1 }
 0x14e   : > { %1089 = vst.msk [vmem:[%s1633_s17 + $0x90] sm:$0xff] %vm1070_vm3, %v1024_v42  ;;  %1121 = vst.msk [vmem:[%s1633_s17 + $0x190] sm:$0xff] %vm1070_vm3, %v1056_v43  ;;  %v1025_v48 = vmax.f32 %v827_v44, 0.0  ;;  %v1057_v49 = vmax.f32 %v955_v45, 0.0 }
 0x150   : > { %1090 = vst.msk [vmem:[%s1633_s17 + $0x98] sm:$0xff] %vm1070_vm3, %v1025_v48  ;;  %1122 = vst.msk [vmem:[%s1633_s17 + $0x198] sm:$0xff] %vm1070_vm3, %v1057_v49 }
 0x151   : > { %v831_v50 = vpop.f32.mrb[40].mxu0  ;;  %v959_v51 = vpop.f32.mrb[40].mxu1 }
 0x152   : > { %v832_v52 = vadd.f32 %v1624_v15, %v831_v50  ;;  %v960_v53 = vadd.f32 %v1624_v15, %v959_v51  ;;  %v833_v54 = vpop.f32.mrb[41].mxu0  ;;  %v961_v55 = vpop.f32.mrb[41].mxu1 }
 0x153   : > { %v834_v56 = vpop.f32.mrb[42].mxu0  ;;  %v962_v57 = vpop.f32.mrb[42].mxu1 }
 0x154   : > { %v1026_v58 = vmax.f32 %v832_v52, 0.0  ;;  %v1058_v59 = vmax.f32 %v960_v53, 0.0  ;;  %v835_v60 = vadd.f32 %v1624_v15, %v834_v56  ;;  %v963_v61 = vadd.f32 %v1624_v15, %v962_v57  ;;  %v836_v62 = vpop.f32.mrb[43].mxu0  ;;  %v964_v63 = vpop.f32.mrb[43].mxu1 }
 0x156   : > { %1091 = vst.msk [vmem:[%s1633_s17 + $0xa0] sm:$0xff] %vm1070_vm3, %v1026_v58  ;;  %1123 = vst.msk [vmem:[%s1633_s17 + $0x1a0] sm:$0xff] %vm1070_vm3, %v1058_v59  ;;  %v1027_v0 = vmax.f32 %v835_v60, 0.0  ;;  %v1059_v1 = vmax.f32 %v963_v61, 0.0 }
 0x158   : > { %1092 = vst.msk [vmem:[%s1633_s17 + $0xa8] sm:$0xff] %vm1070_vm3, %v1027_v0  ;;  %1124 = vst.msk [vmem:[%s1633_s17 + $0x1a8] sm:$0xff] %vm1070_vm3, %v1059_v1 }
 0x159   : > { %v839_v2 = vpop.f32.mrb[44].mxu0  ;;  %v967_v3 = vpop.f32.mrb[44].mxu1 }
 0x15a   : > { %v840_v4 = vadd.f32 %v1624_v15, %v839_v2  ;;  %v968_v5 = vadd.f32 %v1624_v15, %v967_v3  ;;  %v841_v6 = vpop.f32.mrb[45].mxu0  ;;  %v969_v7 = vpop.f32.mrb[45].mxu1 }
 0x15b   : > { %v842_v8 = vpop.f32.mrb[46].mxu0  ;;  %v970_v9 = vpop.f32.mrb[46].mxu1 }
 0x15c   : > { %v1028_v10 = vmax.f32 %v840_v4, 0.0  ;;  %v1060_v11 = vmax.f32 %v968_v5, 0.0  ;;  %v843_v12 = vadd.f32 %v1624_v15, %v842_v8  ;;  %v971_v13 = vadd.f32 %v1624_v15, %v970_v9  ;;  %v844_v14 = vpop.f32.mrb[47].mxu0  ;;  %v972_v16 = vpop.f32.mrb[47].mxu1 }
 0x15e   : > { %1093 = vst.msk [vmem:[%s1633_s17 + $0xb0] sm:$0xff] %vm1070_vm3, %v1028_v10  ;;  %1125 = vst.msk [vmem:[%s1633_s17 + $0x1b0] sm:$0xff] %vm1070_vm3, %v1060_v11  ;;  %v1029_v17 = vmax.f32 %v843_v12, 0.0  ;;  %v1061_v18 = vmax.f32 %v971_v13, 0.0 }
 0x160   : > { %1094 = vst.msk [vmem:[%s1633_s17 + $0xb8] sm:$0xff] %vm1070_vm3, %v1029_v17  ;;  %1126 = vst.msk [vmem:[%s1633_s17 + $0x1b8] sm:$0xff] %vm1070_vm3, %v1061_v18 }
 0x161   : > { %v847_v19 = vpop.f32.mrb[48].mxu0  ;;  %v975_v20 = vpop.f32.mrb[48].mxu1 }
 0x162   : > { %v848_v21 = vadd.f32 %v1624_v15, %v847_v19  ;;  %v976_v22 = vadd.f32 %v1624_v15, %v975_v20  ;;  %v849_v23 = vpop.f32.mrb[49].mxu0  ;;  %v977_v24 = vpop.f32.mrb[49].mxu1 }
 0x163   : > { %v850_v25 = vpop.f32.mrb[50].mxu0  ;;  %v978_v26 = vpop.f32.mrb[50].mxu1 }
 0x164   : > { %v1030_v27 = vmax.f32 %v848_v21, 0.0  ;;  %v1062_v28 = vmax.f32 %v976_v22, 0.0  ;;  %v851_v29 = vadd.f32 %v1624_v15, %v850_v25  ;;  %v979_v30 = vadd.f32 %v1624_v15, %v978_v26  ;;  %v852_v31 = vpop.f32.mrb[51].mxu0  ;;  %v980_v32 = vpop.f32.mrb[51].mxu1 }
 0x166   : > { %1095 = vst.msk [vmem:[%s1633_s17 + $0xc0] sm:$0xff] %vm1070_vm3, %v1030_v27  ;;  %1127 = vst.msk [vmem:[%s1633_s17 + $0x1c0] sm:$0xff] %vm1070_vm3, %v1062_v28  ;;  %v1031_v33 = vmax.f32 %v851_v29, 0.0  ;;  %v1063_v34 = vmax.f32 %v979_v30, 0.0 }
 0x168   : > { %1096 = vst.msk [vmem:[%s1633_s17 + $0xc8] sm:$0xff] %vm1070_vm3, %v1031_v33  ;;  %1128 = vst.msk [vmem:[%s1633_s17 + $0x1c8] sm:$0xff] %vm1070_vm3, %v1063_v34 }
 0x169   : > { %v855_v35 = vpop.f32.mrb[52].mxu0  ;;  %v983_v36 = vpop.f32.mrb[52].mxu1 }
 0x16a   : > { %v856_v37 = vadd.f32 %v1624_v15, %v855_v35  ;;  %v984_v38 = vadd.f32 %v1624_v15, %v983_v36  ;;  %v857_v39 = vpop.f32.mrb[53].mxu0  ;;  %v985_v40 = vpop.f32.mrb[53].mxu1 }
 0x16b   : > { %v858_v41 = vpop.f32.mrb[54].mxu0  ;;  %v986_v42 = vpop.f32.mrb[54].mxu1 }
 0x16c   : > { %v1032_v43 = vmax.f32 %v856_v37, 0.0  ;;  %v1064_v44 = vmax.f32 %v984_v38, 0.0  ;;  %v859_v45 = vadd.f32 %v1624_v15, %v858_v41  ;;  %v987_v46 = vadd.f32 %v1624_v15, %v986_v42  ;;  %v860_v47 = vpop.f32.mrb[55].mxu0  ;;  %v988_v48 = vpop.f32.mrb[55].mxu1 }
 0x16e   : > { %1097 = vst.msk [vmem:[%s1633_s17 + $0xd0] sm:$0xff] %vm1070_vm3, %v1032_v43  ;;  %1129 = vst.msk [vmem:[%s1633_s17 + $0x1d0] sm:$0xff] %vm1070_vm3, %v1064_v44  ;;  %v1033_v49 = vmax.f32 %v859_v45, 0.0  ;;  %v1065_v50 = vmax.f32 %v987_v46, 0.0 }
 0x170   : > { %1098 = vst.msk [vmem:[%s1633_s17 + $0xd8] sm:$0xff] %vm1070_vm3, %v1033_v49  ;;  %1130 = vst.msk [vmem:[%s1633_s17 + $0x1d8] sm:$0xff] %vm1070_vm3, %v1065_v50 }
 0x171   : > { %v863_v51 = vpop.f32.mrb[56].mxu0  ;;  %v991_v52 = vpop.f32.mrb[56].mxu1 }
 0x172   : > { %v864_v53 = vadd.f32 %v1624_v15, %v863_v51  ;;  %v992_v54 = vadd.f32 %v1624_v15, %v991_v52  ;;  %v865_v55 = vpop.f32.mrb[57].mxu0  ;;  %v993_v56 = vpop.f32.mrb[57].mxu1 }
 0x173   : > { %v866_v57 = vpop.f32.mrb[58].mxu0  ;;  %v994_v58 = vpop.f32.mrb[58].mxu1 }
 0x174   : > { %v1034_v59 = vmax.f32 %v864_v53, 0.0  ;;  %v1066_v60 = vmax.f32 %v992_v54, 0.0  ;;  %v867_v61 = vadd.f32 %v1624_v15, %v866_v57  ;;  %v995_v62 = vadd.f32 %v1624_v15, %v994_v58  ;;  %v868_v63 = vpop.f32.mrb[59].mxu0  ;;  %v996_v0 = vpop.f32.mrb[59].mxu1 }
 0x176   : > { %1099 = vst.msk [vmem:[%s1633_s17 + $0xe0] sm:$0xff] %vm1070_vm3, %v1034_v59  ;;  %1131 = vst.msk [vmem:[%s1633_s17 + $0x1e0] sm:$0xff] %vm1070_vm3, %v1066_v60  ;;  %v1035_v1 = vmax.f32 %v867_v61, 0.0  ;;  %v1067_v2 = vmax.f32 %v995_v62, 0.0 }
 0x178   : > { %1100 = vst.msk [vmem:[%s1633_s17 + $0xe8] sm:$0xff] %vm1070_vm3, %v1035_v1  ;;  %1132 = vst.msk [vmem:[%s1633_s17 + $0x1e8] sm:$0xff] %vm1070_vm3, %v1067_v2 }
 0x179   : > { %v871_v3 = vpop.f32.mrb[60].mxu0  ;;  %v999_v4 = vpop.f32.mrb[60].mxu1 }
 0x17a   : > { %v872_v5 = vadd.f32 %v1624_v15, %v871_v3  ;;  %v1000_v6 = vadd.f32 %v1624_v15, %v999_v4  ;;  %v873_v7 = vpop.f32.mrb[61].mxu0  ;;  %v1001_v8 = vpop.f32.mrb[61].mxu1 }
 0x17b   : > { %v874_v9 = vpop.f32.mrb[62].mxu0  ;;  %v1002_v10 = vpop.f32.mrb[62].mxu1 }
 0x17c   : > { %v1036_v11 = vmax.f32 %v872_v5, 0.0  ;;  %v1068_v12 = vmax.f32 %v1000_v6, 0.0  ;;  %v875_v13 = vadd.f32 %v1624_v15, %v874_v9  ;;  %v1003_v14 = vadd.f32 %v1624_v15, %v1002_v10  ;;  %v876_v16 = vpop.f32.mrb[63].mxu0  ;;  %v1004_v17 = vpop.f32.mrb[63].mxu1 }
 0x17e   : > { %1101 = vst.msk [vmem:[%s1633_s17 + $0xf0] sm:$0xff] %vm1070_vm3, %v1036_v11  ;;  %1133 = vst.msk [vmem:[%s1633_s17 + $0x1f0] sm:$0xff] %vm1070_vm3, %v1068_v12  ;;  %v1037_v18 = vmax.f32 %v875_v13, 0.0  ;;  %v1069_v19 = vmax.f32 %v1003_v14, 0.0 }
 0x180   : > { %1102 = vst.msk [vmem:[%s1633_s17 + $0xf8] sm:$0xff] %vm1070_vm3, %v1037_v18  ;;  %1134 = vst.msk [vmem:[%s1633_s17 + $0x1f8] sm:$0xff] %vm1070_vm3, %v1069_v19 }
 0x181 PF: > { %s13_s12 = sadd.s32 1, %s1453_s12  }
 0x182   : > { %p10_p4 = scmp.ge.s32.totalorder %s13_s12, 6  }
 0x184   :  { %12 = sbr.rel (!%p10_p4) target bundleno = 1 (0x1), region = 62 }

</bundles_post_ra>
